<compile_context>
chip_gen: v6e
topology: v6e:2x2x1
jax: 0.10.0
libtpu: 0.0.40
codegen_flags: <defaults>
</compile_context>

<pallas_src>
import functools

import jax
import jax.numpy as jnp
from jax.experimental import pallas as pl
from jax.experimental.pallas import tpu as pltpu


def _round_up(x, m):
    return ((x + m - 1) // m) * m


def _head_kernel(x_ref, w_ref, b_ref, o_ref, acc_ref, *,
                 inv_hw, hw_total, thw_blk, mask_tail):
    # x_ref:  (tb, C_pad, thw)     activation tile, native dtype
    # w_ref:  (C_pad, NC_pad)      pre-transposed FC weight, native dtype, resident
    # b_ref:  (1, NC_pad)          bias, native dtype, resident
    # o_ref:  (1, tb, NC_pad)      output tile (resident across the spatial axis)
    # acc_ref:(tb, C_pad) f32      running spatial-sum accumulator
    hw = pl.program_id(1)

    @pl.when(hw == 0)
    def _():
        acc_ref[...] = jnp.zeros_like(acc_ref)

    # Partial global-average-pool: sum this spatial chunk (upcast in-register,
    # so x streams from HBM in its native dtype).
    x = x_ref[...].astype(jnp.float32)                       # (tb, C_pad, thw)
    if mask_tail:
        # Last spatial block may extend past H*W: zero the out-of-bounds lanes
        # (select, not multiply, so garbage NaN/Inf lanes cannot leak through).
        lane = jax.lax.broadcasted_iota(jnp.int32, x.shape, 2)
        x = jnp.where(hw * thw_blk + lane < hw_total, x, 0.0)
    acc_ref[...] += jnp.sum(x, axis=-1)                      # (tb, C_pad)

    @pl.when(hw == pl.num_programs(1) - 1)
    def _():
        pooled = acc_ref[...] * inv_hw                       # mean over true H*W
        out = jnp.dot(pooled.astype(w_ref.dtype), w_ref[...],
                      preferred_element_type=jnp.float32)    # (tb, NC_pad)
        out = out + b_ref[...].astype(jnp.float32)           # broadcast bias
        o_ref[0] = out.astype(o_ref.dtype)


def head_forward(x_nchw, weight, bias):
    """x_nchw: (B, C, H, W); weight: (n_classes, C); bias: (n_classes,)."""
    B, C, H, W = x_nchw.shape
    n_classes, n_features = weight.shape
    assert n_features == C
    HW = H * W
    x_itemsize = jnp.dtype(x_nchw.dtype).itemsize
    w_itemsize = jnp.dtype(weight.dtype).itemsize
    out_dtype = jnp.result_type(x_nchw.dtype, weight.dtype)

    NC_pad = _round_up(n_classes, 128)          # lane-dense weight cols / output

    # ---- per-generation VMEM budgeting -------------------------------------
    try:
        vmem_cap = int(pltpu.get_tpu_info().vmem_capacity_bytes)
    except Exception:
        vmem_cap = 64 * 1024 * 1024             # assume the smallest (v7x) VMEM
    # Leave headroom for compiler-internal scratch; ~52 MiB on v7x, ~100 MiB
    # on 128 MiB v5e/v6e parts.
    vmem_limit = max(32 * 1024 * 1024,
                     min(vmem_cap - 12 * 1024 * 1024, 100 * 1024 * 1024))

    # ---- batch tile: >=2 blocks on the "parallel" axis whenever B >= 2 ------
    tb = 1 if B == 1 else min(8, (B + 1) // 2)

    # Dtype-aware channel alignment: C is the sublane dim of the x tile and the
    # contraction dim of the FC matmul.  For typical heads C is already a
    # multiple of 8/16/32, so this pad is a no-op.
    sub = {4: 8, 2: 16, 1: 32}.get(x_itemsize, 8)
    C_pad = _round_up(C, sub)

    # Resident FC params (constant index_map -> fetched once; double-buffered).
    w_resident = 2 * C_pad * NC_pad * w_itemsize
    reserve = w_resident + 4 * 1024 * 1024      # params + out/acc/bias + margin
    x_budget = max(vmem_limit - reserve, 8 * 1024 * 1024)

    def x_tile_bytes(tb_, thw_):
        # double-buffered x tile, including internal sublane/lane padding
        return 2 * tb_ * C_pad * _round_up(thw_, 128) * x_itemsize

    # Huge-C fallback: shrink the batch tile before overflowing VMEM.
    while tb > 1 and x_tile_bytes(tb, min(HW, 128)) > x_budget:
        tb = max(1, tb // 2)
    # TODO(synk): if even a (1, C_pad, 128) tile overflows VMEM (C in the tens
    # of thousands), the channel axis would need its own "arbitrary" grid axis.

    # ---- spatial tile: full H*W when it fits (exempt from the 128 rule),
    #      otherwise the largest 128-multiple that fits the budget. -----------
    THW_CAP = 32 * 1024
    if HW <= THW_CAP and x_tile_bytes(tb, HW) <= x_budget:
        thw = HW
    else:
        max_thw = x_budget // (2 * tb * C_pad * x_itemsize)
        thw = min(THW_CAP, max(128, (max_thw // 128) * 128))

    n_bblk = (B + tb - 1) // tb
    n_hwblk = (HW + thw - 1) // thw
    mask_tail = (HW % thw) != 0

    # ---- inputs: x streams untouched (native dtype, no B/HW padding). -------
    x_flat = x_nchw.reshape(B, C, HW)           # contiguous reshape: no copy
    if C_pad != C:
        # tiny (< sub rows) channel pad only; zeros are neutral for the sum
        x_flat = jnp.pad(x_flat, ((0, 0), (0, C_pad - C), (0, 0)))

    # Pre-transposed, zero-padded FC params, kept in their NATIVE dtype.
    w_t = jnp.pad(weight.T, ((0, C_pad - C), (0, NC_pad - n_classes)))
    b2 = jnp.pad(bias, (0, NC_pad - n_classes)).reshape(1, NC_pad)

    kernel = functools.partial(_head_kernel, inv_hw=1.0 / float(HW),
                               hw_total=HW, thw_blk=thw, mask_tail=mask_tail)

    out = pl.pallas_call(
        kernel,
        out_shape=jax.ShapeDtypeStruct((n_bblk, tb, NC_pad), out_dtype),
        grid_spec=pltpu.PrefetchScalarGridSpec(
            num_scalar_prefetch=0,
            grid=(n_bblk, n_hwblk),
            in_specs=[
                # Activations: tiled over (batch, spatial); ragged last blocks.
                pl.BlockSpec((tb, C_pad, thw), lambda bi, hwi: (bi, 0, hwi)),
                # Weight / bias: constant index_map -> fetched once, resident.
                pl.BlockSpec((C_pad, NC_pad), lambda bi, hwi: (0, 0)),
                pl.BlockSpec((1, NC_pad), lambda bi, hwi: (0, 0)),
            ],
            # (n_bblk, tb, NC_pad) output: block last-two dims are full-extent /
            # 128-multiple for any tb, and stores stay lane-dense.
            out_specs=pl.BlockSpec((1, tb, NC_pad), lambda bi, hwi: (bi, 0, 0)),
            scratch_shapes=[pltpu.VMEM((tb, C_pad), jnp.float32)],
        ),
        compiler_params=pltpu.CompilerParams(
            dimension_semantics=("parallel", "arbitrary"),
            vmem_limit_bytes=int(vmem_limit),
        ),
    )(x_flat, w_t, b2)

    return out.reshape(n_bblk * tb, NC_pad)[:B, :n_classes]


if __name__ == "__main__":
    key = jax.random.PRNGKey(0)
    k_x, k_w, k_b = jax.random.split(key, 3)

    # Small shapes consistent with the module's forward.
    B, C, H, W = 2, 4, 16, 16          # n_features = C = 4
    n_classes = 8

    x = jax.random.normal(k_x, (B, C, H, W), dtype=jnp.float32)

    # Deterministic Linear params (PyTorch-style uniform(-1/sqrt(fan_in), ...)).
    bound = 1.0 / jnp.sqrt(jnp.float32(C))
    weight = jax.random.uniform(k_w, (n_classes, C), jnp.float32, -bound, bound)
    bias = jax.random.uniform(k_b, (n_classes,), jnp.float32, -bound, bound)

    out = head_forward(x, weight, bias)
    out = jax.block_until_ready(out)

    # Pure-JAX reference check of the forward semantics.
    ref = jnp.mean(x, axis=(2, 3)) @ weight.T + bias
    assert out.shape == (B, n_classes)
    assert jnp.allclose(out, ref, atol=1e-5, rtol=1e-5)

    print("KERNEL_OK")
</pallas_src>

<mosaic_0001>
module attributes {stable_mosaic.version = 11 : i64} {
  func.func @_head_kernel(%arg0: i32, %arg1: i32, %arg2: memref<1x8x256xf32, #tpu.memory_space<vmem>>, %arg3: memref<8x128xf32, #tpu.memory_space<vmem>>, %arg4: memref<1x128xf32, #tpu.memory_space<vmem>>, %arg5: memref<1x1x128xf32, #tpu.memory_space<vmem>>, %arg6: memref<1x8xf32, #tpu.memory_space<vmem>>) attributes {dimension_semantics = [#tpu.dimension_semantics<parallel>, #tpu.dimension_semantics<arbitrary>], iteration_bounds = array<i64: 2, 1>, scalar_prefetch = 0 : i64, scratch_operands = 1 : i64, tpu.core_type = #tpu.core_type<tc>, window_params = [{transform_indices = @transform_0, window_bounds = array<i64: 1, 8, 256>}, {pipeline_mode = #tpu.pipeline_mode<synchronous>, transform_indices = @transform_1, window_bounds = array<i64: 8, 128>}, {pipeline_mode = #tpu.pipeline_mode<synchronous>, transform_indices = @transform_2, window_bounds = array<i64: 1, 128>}, {transform_indices = @transform_3, window_bounds = array<i64: 1, 1, 128>}]} {
    %c0_i32 = arith.constant 0 : i32
    %0 = arith.cmpi eq, %arg1, %c0_i32 : i32
    %1 = arith.extui %0 : i1 to i32
    %c0_i32_0 = arith.constant 0 : i32
    %2 = arith.cmpi ne, %1, %c0_i32_0 : i32
    scf.if %2 {
      %cst_9 = arith.constant 0.000000e+00 : f32
      %11 = vector.broadcast %cst_9 : f32 to vector<1x8xf32>
      %c0_10 = arith.constant 0 : index
      %c0_11 = arith.constant 0 : index
      %12 = vector.load %arg6[%c0_10, %c0_11] : memref<1x8xf32, #tpu.memory_space<vmem>>, vector<1x8xf32>
      tpu.vector_store %arg6[%c0_10, %c0_11], %11 {strides = array<i32>} : memref<1x8xf32, #tpu.memory_space<vmem>>, vector<1x8xf32>,
    } else {
    }
    %c0 = arith.constant 0 : index
    %c0_1 = arith.constant 0 : index
    %c0_2 = arith.constant 0 : index
    %3 = vector.load %arg2[%c0, %c0_1, %c0_2] : memref<1x8x256xf32, #tpu.memory_space<vmem>>, vector<1x8x256xf32>
    %c0_3 = arith.constant 0 : index
    %c0_4 = arith.constant 0 : index
    %4 = vector.load %arg6[%c0_3, %c0_4] : memref<1x8xf32, #tpu.memory_space<vmem>>, vector<1x8xf32>
    %cst = arith.constant dense<0.000000e+00> : vector<1x8xf32>
    %5 = vector.multi_reduction <add>, %3, %cst [2] : vector<1x8x256xf32> to vector<1x8xf32>
    %6 = arith.addf %4, %5 : vector<1x8xf32>
    %c0_5 = arith.constant 0 : index
    %c0_6 = arith.constant 0 : index
    %7 = vector.load %arg6[%c0_5, %c0_6] : memref<1x8xf32, #tpu.memory_space<vmem>>, vector<1x8xf32>
    tpu.vector_store %arg6[%c0_5, %c0_6], %6 {strides = array<i32>} : memref<1x8xf32, #tpu.memory_space<vmem>>, vector<1x8xf32>,
    %c0_i32_7 = arith.constant 0 : i32
    %8 = arith.cmpi eq, %arg1, %c0_i32_7 : i32
    %9 = arith.extui %8 : i1 to i32
    %c0_i32_8 = arith.constant 0 : i32
    %10 = arith.cmpi ne, %9, %c0_i32_8 : i32
    scf.if %10 {
      %c0_9 = arith.constant 0 : index
      %c0_10 = arith.constant 0 : index
      %11 = vector.load %arg6[%c0_9, %c0_10] : memref<1x8xf32, #tpu.memory_space<vmem>>, vector<1x8xf32>
      %cst_11 = arith.constant 3.906250e-03 : f32
      %12 = vector.broadcast %cst_11 : f32 to vector<1x8xf32>
      %13 = arith.mulf %11, %12 : vector<1x8xf32>
      %c0_12 = arith.constant 0 : index
      %c0_13 = arith.constant 0 : index
      %14 = vector.load %arg3[%c0_12, %c0_13] : memref<8x128xf32, #tpu.memory_space<vmem>>, vector<8x128xf32>
      %cst_14 = arith.constant dense<0.000000e+00> : vector<1x128xf32>
      %15 = tpu.matmul %13, %14, %cst_14 {dimension_numbers = #tpu.dot_dimension_numbers<[1], [0], [0], [1], [0, 0, 1, 1], [], []>} : vector<1x8xf32>, vector<8x128xf32>, vector<1x128xf32> -> vector<1x128xf32>
      %c0_15 = arith.constant 0 : index
      %c0_16 = arith.constant 0 : index
      %16 = vector.load %arg4[%c0_15, %c0_16] : memref<1x128xf32, #tpu.memory_space<vmem>>, vector<1x128xf32>
      %17 = arith.addf %15, %16 : vector<1x128xf32>
      %c0_17 = arith.constant 0 : index
      %c0_18 = arith.constant 0 : index
      %c0_19 = arith.constant 0 : index
      %18 = vector.load %arg5[%c0_17, %c0_18, %c0_19] : memref<1x1x128xf32, #tpu.memory_space<vmem>>, vector<1x1x128xf32>
      %19 = vector.shape_cast %18 : vector<1x1x128xf32> to vector<1x128xf32>
      %20 = vector.shape_cast %17 : vector<1x128xf32> to vector<1x1x128xf32>
      tpu.vector_store %arg5[%c0_17, %c0_18, %c0_19], %20 {strides = array<i32>} : memref<1x1x128xf32, #tpu.memory_space<vmem>>, vector<1x1x128xf32>,
    } else {
    }
    return
  }
  func.func @transform_0(%arg0: i32, %arg1: i32) -> (i32, i32, i32) {
    %c0_i32 = arith.constant 0 : i32
    %c0_i32_0 = arith.constant 0 : i32
    return %arg0, %c0_i32, %arg1 : i32, i32, i32
  }
  func.func @transform_1(%arg0: i32, %arg1: i32) -> (i32, i32) {
    %c0_i32 = arith.constant 0 : i32
    %c0_i32_0 = arith.constant 0 : i32
    %c0_i32_1 = arith.constant 0 : i32
    return %c0_i32, %c0_i32_0 : i32, i32
  }
  func.func @transform_2(%arg0: i32, %arg1: i32) -> (i32, i32) {
    %c0_i32 = arith.constant 0 : i32
    %c0_i32_0 = arith.constant 0 : i32
    %c0_i32_1 = arith.constant 0 : i32
    return %c0_i32, %c0_i32_0 : i32, i32
  }
  func.func @transform_3(%arg0: i32, %arg1: i32) -> (i32, i32, i32) {
    %c0_i32 = arith.constant 0 : i32
    %c0_i32_0 = arith.constant 0 : i32
    %c0_i32_1 = arith.constant 0 : i32
    return %arg0, %c0_i32, %c0_i32_0 : i32, i32, i32
  }
}

</mosaic_0001>

<bundles_post_ra>
// kernel: tpu_custom_call.1
= control target key start
LH: loop header
LB: loop body
LE: loop exit
PB: predicated region body
PF: predicated region fallthrough
CT: control target
= control target key end

     0   :  { %8 = vsyncpa [#allocation4], 0  ;;  %s960_s0 = inlined_call_operand.hbm [shape: f32[2,8,256], index: 0, kind: input, shape index: {}]   ;;  %s961_s1 = inlined_call_operand.hbm [shape: f32[8,128], index: 1, kind: input, shape index: {}]   ;;  %s962_s2 = inlined_call_operand.vmem [shape: f32[1,128], index: 2, kind: input, shape index: {}]   ;;  %s963_s3 = inlined_call_operand.hbm [shape: f32[2,1,128], index: 3, kind: output, shape index: {}]  }
   0x1   :  { %10 = vsyncpa [#allocation4 + $0x1], 0 }
   0x2   :  { %11 = vsyncpa [#allocation7], 0 }
   0x3   :  { %12 = vsyncpa [#allocation5], 0 }
   0x4   :  { %14 = vsyncpa [#allocation5 + $0x1], 0  ;;  %s787_s12 = smov 0   ;;  %s789_s13 = smov 0  }
   0x5   :  { %s791_s14 = smov 0   ;;  %s793_s15 = smov 0  }
   0x6   :  { %s795_s16 = smov 0   ;;  %s797_s17 = smov 0  }
   0x7 LB: > { %s519_s18 = sadd.s32 4294967295, %s758_s17   ;;  %s520_s19 = sadd.s32 4294967294, %s758_s17   ;;  %s758_s17 = sphi %s797_s17, %s20_s17   ;;  %s754_s16 = sphi %s795_s16, %s980_s16   ;;  %s750_s15 = sphi %s793_s15, %s979_s15   ;;  %s746_s14 = sphi %s791_s14, %s978_s14   ;;  %s742_s13 = sphi %s789_s13, %s977_s13   ;;  %s738_s12 = sphi %s787_s12, %s976_s12  }
   0x8   : > { %p54_p0 = scmp.ne.s32.totalorder %s742_s13, %s738_s12  ;;  %p821_p1 = scmp.eq.s32.totalorder %s519_s18, 0 }
   0x9   : > { %p825_p2 = scmp.eq.s32.totalorder %s519_s18, 1  ;;  %p126_p3 = scmp.eq.s32.totalorder %s520_s19, 1 }
   0xa   : > { %p831_p4 = por %p821_p1, %p54_p0  ;;  %p521_p5 = scmp.ge.s32.totalorder %s758_s17, 1 }
   0xb   : > { %p836_p6 = por %p126_p3, %p54_p0  ;;  %p133_p7 = scmp.lt.s32.totalorder %s758_s17, 3 }
   0xc   : > { %s967_s22 = scalar_select %p831_p4, 1, 0 }
   0xd   : > { %s968_s23 = scalar_select %p836_p6, 1, 0 }
   0xe   : > { %p841_p8 = pnand %p521_p5, %p133_p7  ;;  %s760_s25 = smov [#allocation6]  }
   0xf   : > { %s146_s26 = sshll.u32 %s760_s25, 4  ;;  %s32_s28 = sadd.s32 1, %s754_s16  ;;  %s147_s26 = int_to_ptr.vmem [resolvable:$true] %s146_s26 }
  0x10   : > { %p550_p10 = pneg %p841_p8  ;;  %s41_s29 = sadd.s32 1, %s746_s14 }
  0x11   : > { %p34_p12 = scmp.ge.s32.totalorder %s32_s28, 2  ;;  %s631_s30 = scalar_lea.vmem %s147_s26, 128 }
  0x12   : > { %p850_p11 = pnand %p550_p10, %p821_p1  ;;  %p632_p0 = scmp.ne.s32.totalorder %s147_s26, %s631_s30 }
  0x13   : > { %p639_p7 = scmp.lt.s32.totalorder %s147_s26, %s147_s26  ;;  %p640_p6 = scmp.lt.s32.totalorder %s631_s30, %s631_s30 }
  0x14   : > { %p622_p13 = pneg %p850_p11 }
  0x15   : > { %p641_p9 = por %p640_p6, %p639_p7 }
  0x16   : > { %p634_p3 = pnand %p632_p0, %p622_p13 }
  0x18   : > { %p635_p5 = pneg %p634_p3 }
  0x1a   : > { %p642_p4 = pnand %p641_p9, %p635_p5 }
  0x1c   : > { %645 = shalt.err (!%p642_p4)
}
  0x1d   : > { %553 = dma.hbm_to_vmem [thread:$0]  (!%p850_p11), %s961_s1, 128, %s147_s26, [#allocation7]  }
  0x1e   : > { %s982_s28 = smov (%p34_p12, %s32_s28), 0  ;;  %p48_p6 = scmp.ne.s32.totalorder %s746_s14, %s742_s13 }
  0x1f   : > { %p49_p4 = scmp.eq.s32.totalorder %s758_s17, 0  ;;  %s36_s6 = ssub.s32 %s754_s16, %s982_s28 }
  0x20   : > { %p563_p9 = scmp.lt.s32.totalorder %s758_s17, 2  ;;  %p39_p10 = scmp.eq.s32.totalorder %s36_s6, 0 }
  0x21   : > { %p50_p13 = por %p49_p4, %p48_p6  ;;  %p873_p0 = por %p825_p2, %p48_p6 }
  0x22   : > { %s160_s8 = sand.u32 1, %s746_s14   ;;  %s534_s11 = sshll.u32 %s754_s16, 8 }
  0x23   : > { %s879_s9 = scalar_select %p39_p10, %s746_s14, %s41_s29  }
  0x24   : > { %s524_s10 = sshll.u32 %s160_s8, 4  ;;  %s172_s25 = scalar_lea.hbm %s960_s0, %s534_s11 }
  0x25   : > { %s164_s26 = scalar_lea.vmem [#allocation3], %s524_s10  ;;  %p885_p11 = pnand %p563_p9, %p50_p13 }
  0x26   : > { %s174_s27 = sshll.u32 %s164_s26, 4  ;;  %s161_s21 = scalar_lea.sflag [#allocation4], %s160_s8  ;;  %s175_s27 = int_to_ptr.vmem [resolvable:$true] %s174_s27 }
  0x27   : > { %p648_p2 = pneg %p885_p11  ;;  %s659_s4 = scalar_lea.vmem %s175_s27, 256 }
  0x28   : > { %p660_p12 = scmp.ne.s32.totalorder %s175_s27, %s659_s4  ;;  %s761_s29 = smov [#allocation3]  }
  0x29   : > { %s664_s5 = sshll.u32 %s761_s29, 4  ;;  %s665_s5 = int_to_ptr.vmem [resolvable:$false] %s664_s5 }
  0x2a   : > { %p662_p3 = pnand %p660_p12, %p648_p2  ;;  %s666_s6 = scalar_lea.vmem %s665_s5, 512 }
  0x2b   : > { %p667_p7 = scmp.lt.s32.totalorder %s175_s27, %s665_s5  ;;  %p668_p6 = scmp.lt.s32.totalorder %s666_s6, %s659_s4 }
  0x2c   : > { %p663_p5 = pneg %p662_p3 }
  0x2d   : > { %p669_p4 = por %p668_p6, %p667_p7 }
  0x2f   : > { %p670_p10 = pnand %p669_p4, %p663_p5 }
  0x31   : > { %673 = shalt.err (!%p670_p10)
}
  0x32   : > { %557 = dma.hbm_to_vmem [thread:$0]  (!%p885_p11), %s172_s25, 256, %s175_s27, %s161_s21  }
  0x33   : > { %183 = sbr.rel (%p841_p8) target bundleno = 563 (0x233), region = 32  ;;  %s896_s8 = sand.u32 (!%p841_p8), 1, %s742_s13  }
  0x34   : > { %s528_s10 = sshll.u32 (!%p841_p8), %s896_s8, 4  ;;  %s186_s11 = scalar_lea.sflag (!%p841_p8), [#allocation4], %s896_s8 }
  0x35   : > { %s189_s18 = scalar_lea.vmem (!%p841_p8), [#allocation3], %s528_s10  ;;  %p973_p9 = scmp.ne.s32.totalorder (!%p841_p8), %s967_s22, 0 }
  0x38   : > { %725 = dma.done.wait (%p973_p9), %s186_s11, 256  }
  0x39   : > { %727 = vsyncadd (%p973_p9), %s186_s11, 4294967040 }
  0x3a   : > { %729 = dma.done.wait (%p821_p1), [#allocation7], 128  }
  0x3b   : > { %731 = vsyncadd (%p821_p1), [#allocation7], 4294967168  ;;  %v222_v0 = vld [vmem:[%s189_s18] sm:$0xff]  ;;  %v223_v1 = vld [vmem:[%s189_s18 + $0x8] sm:$0xff]  ;;  %v762_v3 = vmov 0   ;;  %v229_v4 = vlaneseq  ;;  %vm220_vm0 = vcmask 57344  }
  0x3c   : > { %v225_v2 = vadd.f32 %v223_v1, %v222_v0  ;;  %619 = vset.pattern.permute.xlu0 %v762_v3  ;;  %v763_v8 = vmov 1966171168   ;;  %v764_v39 = vmov 0.0   ;;  %v342_v43 = vld [vmem:[#allocation6] sm:$0xff]  ;;  %vm765_vm1 = vmmov 0   ;;  %s531_s24 = sshll.u32 %s750_s15, 4 }
  0x3d   : > { %v230_v5 = vshrl.u32 %v229_v4, 7  ;;  %v314_v6 = vand.u32 127, %v229_v4  ;;  %v266_v9 = vunpack.c.l.s4 %v763_v8  ;;  %221 = vst.msk [vmem:[#allocation2] sm:$0x1] %vm220_vm0, %v764_v39  ;;  %537 = vmatprep.subr.mxu0 %v764_v39  ;;  %539 = vmatprep.mubr.msk.f32.mxu0 %vm765_vm1, %v764_v39  ;;  %vm344_vm2 = vcmask 64512   ;;  %s214_s19 = scalar_lea.vmem [#allocation8], %s896_s8  ;;  %s918_s30 = scalar_lea.hbm %s963_s3, %s531_s24 }
  0x3e   : > { %226 = vadd.xlane.f32.xlu0 %v225_v2  ;;  %538 = vmatpush3.msra.mxu0 %v342_v43  ;;  %v343_v52 = vld [vmem:[%s962_s2] sm:$0x1]  ;;  %s432_s25 = sshll.u32 %s214_s19, 4  ;;  %s420_s21 = scalar_lea.sflag [#allocation5], %s896_s8  ;;  %s433_s25 = int_to_ptr.vmem [resolvable:$true] %s432_s25 }
  0x3f   : > { %v317_v7 = vsub.s32 %v314_v6, %v230_v5  ;;  %v267_v10 = vunpack.c.0.s8 %v266_v9  ;;  %v231_v11 = vsub.s32 0, %v230_v5  ;;  %v235_v12 = vsub.s32 1, %v230_v5  ;;  %s674_s4 = scalar_lea.vmem %s433_s25, 16  ;;  %s766_s29 = smov [#allocation8]  }
  0x40   : > { %v239_v13 = vsub.s32 2, %v230_v5  ;;  %v243_v14 = vsub.s32 3, %v230_v5  ;;  %v247_v15 = vsub.s32 4, %v230_v5  ;;  %v251_v16 = vsub.s32 5, %v230_v5  ;;  %p675_p1 = scmp.ne.s32.totalorder %s433_s25, %s674_s4  ;;  %s678_s15 = sshll.u32 %s766_s29, 4  ;;  %s679_s15 = int_to_ptr.vmem [resolvable:$false] %s678_s15 }
  0x41   : > { %v255_v17 = vsub.s32 6, %v230_v5  ;;  %v259_v18 = vsub.s32 7, %v230_v5  ;;  %v270_v20 = vsub.s32 %v267_v10, %v230_v5  ;;  %s680_s5 = scalar_lea.vmem %s679_s15, 32  ;;  %p681_p11 = scmp.lt.s32.totalorder %s433_s25, %s679_s15 }
  0x42   : > { %p676_p8 = pnand %p675_p1, %p873_p0  ;;  %p682_p2 = scmp.lt.s32.totalorder %s680_s5, %s674_s4 }
  0x44   : > { %v224_v47 = vld [vmem:[#allocation2] sm:$0x1]  ;;  %p677_p13 = pneg %p676_p8  ;;  %p683_p12 = por %p682_p2, %p681_p11 }
  0x46   : > { %p684_p3 = pnand %p683_p12, %p677_p13 }
  0xc7   : > { %v227_v19 = vpop.xlane.xlu0 %226 }
  0xc8   : > { %v232_v21 = vrot.slane %v227_v19, %v231_v11  ;;  %v236_v22 = vrot.slane %v227_v19, %v235_v12  ;;  %v240_v23 = vrot.slane %v227_v19, %v239_v13  ;;  %v244_v24 = vrot.slane %v227_v19, %v243_v14 }
  0xc9   : > { %v248_v25 = vrot.slane %v227_v19, %v247_v15  ;;  %v252_v26 = vrot.slane %v227_v19, %v251_v16  ;;  %v256_v27 = vrot.slane %v227_v19, %v255_v17  ;;  %v260_v28 = vrot.slane %v227_v19, %v259_v18 }
  0xca   : > { %v261_v29 = vcombine.low %v232_v21, %v236_v22  ;;  %v262_v30 = vcombine.low %v240_v23, %v244_v24 }
  0xcb   : > { %v263_v31 = vcombine.low %v248_v25, %v252_v26  ;;  %v264_v32 = vcombine.low %v256_v27, %v260_v28 }
  0xcc   : > { %v271_v33 = vrot.slane %v261_v29, %v270_v20  ;;  %v278_v34 = vrot.slane %v262_v30, %v270_v20 }
  0xcd   : > { %v285_v35 = vrot.slane %v263_v31, %v270_v20  ;;  %v292_v36 = vrot.slane %v264_v32, %v270_v20 }
  0xce   : > { %v293_v37 = vcombine.low %v271_v33, %v278_v34 }
  0xcf   : > { %v294_v38 = vcombine.low %v285_v35, %v292_v36 }
  0xd0   : > { %v301_v40 = vrot.slane %v293_v37, %v270_v20 }
  0xd1   : > { %v308_v41 = vrot.slane %v294_v38, %v270_v20 }
  0xd3   : > { %v309_v42 = vcombine.low %v301_v40, %v308_v41 }
  0xd5   : > { %311 = vperm.xlu0 %619, %v309_v42  }
 0x150   : > { %v312_v44 = vpop.permute.xlu0 %311 }
 0x151   : > { %v318_v45 = vrot.slane %v312_v44, %v317_v7 }
 0x153   : > { %v325_v46 = vrot.slane %v318_v45, %v270_v20 }
 0x155   : > { %v332_v48 = vrot.slane %v325_v46, %v270_v20 }
 0x157   : > { %v334_v49 = vadd.f32 %v332_v48, %v224_v47 }
 0x159   : > { %336 = vst.msk [vmem:[#allocation2] sm:$0x1] %vm220_vm0, %v334_v49 }
 0x160   : > { %v340_v50 = vld [vmem:[#allocation2] sm:$0x1] }
 0x161   : > { %v341_v51 = vmul.f32 0.00390625, %v340_v50 }
 0x163   : > { %540 = vmatmul.mubr.msk.f32.vlgmr.msra.gmra.mxu0 %vm344_vm2, %v341_v51 }
 0x223   : > { %v414_v53 = vpop.f32.mrf.mxu0 }
 0x224   : > { %v415_v54 = vadd.f32 %v414_v53, %v343_v52 }
 0x225   : > { %v541_v55 = vpop.f32.mrf.mxu0 }
 0x226   : > { %418 = vst [vmem:[%s214_s19] sm:$0x1] %v415_v54 }
 0x227   : > { %687 = shalt.err (!%p684_p3)
}
 0x228   : > { %s688_s6 = scalar_lea.hbm %s918_s30, 16  ;;  %s692_s11 = scalar_lea.hbm %s963_s3, 32 }
 0x229   : > { %p689_p5 = scmp.ne.s32.totalorder %s918_s30, %s688_s6  ;;  %p693_p4 = scmp.lt.s32.totalorder %s918_s30, %s963_s3 }
 0x22a   : > { %p694_p10 = scmp.lt.s32.totalorder %s692_s11, %s688_s6 }
 0x22b   : > { %p690_p7 = pnand %p689_p5, %p873_p0 }
 0x22c   : > { %p695_p9 = por %p694_p10, %p693_p4 }
 0x22d   : > { %p691_p6 = pneg %p690_p7 }
 0x22f   : > { %p696_p1 = pnand %p695_p9, %p691_p6 }
 0x231   : > { %699 = shalt.err (!%p696_p1)
}
 0x232   : > { %548 = dma.vmem_to_hbm [thread:$0]  (%p873_p0), %s433_s25, 16, %s918_s30, %s420_s21  }
 0x233 PF: > { %s444_s22 = sand.u32 1, %s738_s12   ;;  %p974_p8 = scmp.ne.s32.totalorder %s968_s23, 0 }
 0x234   : > { %p975_p13 = scmp.ge.s32.totalorder %s758_s17, 2  ;;  %s445_s24 = scalar_lea.sflag [#allocation5], %s444_s22 }
 0x236   : > { %p559_p11 = pnand %p975_p13, %p974_p8 }
 0x238   : > { %p560_p2 = pneg %p559_p11 }
 0x23a   : > { %733 = dma.done.wait (%p560_p2), %s445_s24, 16  }
 0x23b   : > { %735 = vsyncadd (%p560_p2), %s445_s24, 4294967280  ;;  %s20_s17 = sadd.s32 1, %s758_s17   ;;  %s976_s12 = smov %s742_s13 }
 0x23c   : > { %p17_p12 = scmp.ge.s32.totalorder %s20_s17, 4   ;;  %s977_s13 = smov %s746_s14 }
 0x23d   : > { %s978_s14 = smov %s879_s9  ;;  %s979_s15 = smov %s754_s16 }
 0x23e   : > { %s980_s16 = smov %s982_s28  ;;  %19 = sbr.rel (!%p17_p12) target bundleno = 7 (0x7), region = 89 }
 0x243   :  { %449 = vsyncpa [#allocation4], 1 }
 0x244   :  { %451 = vsyncpa [#allocation4 + $0x1], 1 }
 0x245   :  { %452 = vsyncpa [#allocation7], 1 }
 0x246   :  { %453 = vsyncpa [#allocation5], 1 }
 0x247   :  { %455 = vsyncpa [#allocation5 + $0x1], 1 }

</bundles_post_ra>
